<compile_context>
chip_gen: v7x
topology: tpu7x:2x2x1
jax: 0.10.0
libtpu: 0.0.40
codegen_flags: <defaults>
</compile_context>

<pallas_src>
import jax
import jax.numpy as jnp
from jax.experimental import pallas as pl
from jax.experimental.pallas import tpu as pltpu

PERCEPTION_C = 256
CTRL_D = 3
STATE_D = 6

# ------------------------- packed-weight slab layout -------------------------
# Single bf16 slab, 128 lanes wide; every block start is 16-row aligned.
K_IN = 384            # L1 input: [256 perception | 3 ctrl | 6 state | 1 (bias) | 118 zero]
R_W1 = 0              # rows    0:384 : rows 0:265 = w1, row 265 = b1, rest zero
R_W2 = 384            # rows  384:512 : w2 (128,64) in cols 0:64
R_B2 = 512            # row   512     : b2 in cols 0:64
R_W3 = 528            # rows  528:656 : w3 (64,4) in rows 528:592, cols 0:4
R_B3 = 656            # row   656     : b3 in cols 0:4
R_IW1 = 672           # rows  672:800 : iw1 (7,64) in rows 672:679, ib1 in row 679 (cols 0:64)
R_IW2 = 800           # rows  800:928 : iw2 (64,32) in rows 800:864, cols 0:32
R_IB2 = 928           # row   928     : ib2 in cols 0:32
R_IW3 = 944           # rows  944:1072: iw3 (32,3) in rows 944:976, cols 4:7 (output lanes!)
R_IB3 = 1072          # row  1072     : ib3 in cols 4:7
ROWS = 1088


# ------------------------------ Pallas kernel --------------------------------
def _safety_kernel(pf_ref, aux_ref, w_ref, out_ref):
    f32 = jnp.float32
    bf16 = jnp.bfloat16

    pf = pf_ref[...]            # (BM, 384) bf16 : [pf_mean | ctrl | state | 1 | 0]
    aux = aux_ref[...]          # (BM, 128) f32  : lanes 4:7 = ctrl, lane 7 = 1.0, rest 0

    # ------------------------------ safety network ---------------------------
    # L1 (K=384, single MXU matmul; ctrl/state/bias folded in via packed input)
    h = jnp.dot(pf, w_ref[R_W1:R_W1 + K_IN, :], preferred_element_type=f32)
    h = jnp.maximum(h, 0.0)                                              # (BM,128)

    # L2: 128 -> 64 (weights zero-padded to 128 lanes; lanes 64: stay exactly 0)
    h2 = jnp.dot(h.astype(bf16), w_ref[R_W2:R_W2 + 128, :], preferred_element_type=f32)
    h2 = jnp.maximum(h2 + w_ref[R_B2:R_B2 + 1, :].astype(f32), 0.0)

    # L3: 64 -> 4 (risk logits land in lanes 0:4, zeros elsewhere)
    risk = jnp.dot(h2.astype(bf16), w_ref[R_W3:R_W3 + 128, :], preferred_element_type=f32)
    risk = risk + w_ref[R_B3:R_B3 + 1, :].astype(f32)

    # --------------------------- intervention network ------------------------
    # L1 consumes PRE-sigmoid logits (matches torch.cat([risk_assessment, control])).
    # g_in lanes: 0:4 = risk logits, 4:7 = proposed_control, 7 = 1.0 (bias lane).
    g_in = (risk + aux).astype(bf16)
    g = jnp.dot(g_in, w_ref[R_IW1:R_IW1 + 128, :], preferred_element_type=f32)
    g = jnp.maximum(g, 0.0)

    g2 = jnp.dot(g.astype(bf16), w_ref[R_IW2:R_IW2 + 128, :], preferred_element_type=f32)
    g2 = jnp.maximum(g2 + w_ref[R_IB2:R_IB2 + 1, :].astype(f32), 0.0)

    # L3: 32 -> 3, weights packed into lanes 4:7 -> adjustment lands in output lanes 4:7
    adj = jnp.dot(g2.astype(bf16), w_ref[R_IW3:R_IW3 + 128, :], preferred_element_type=f32)
    adj = adj + w_ref[R_IB3:R_IB3 + 1, :].astype(f32)

    # -------------- fused lane-dense output (no roll, two selects) -----------
    risk_sig = jax.nn.sigmoid(risk)                                      # lanes 0:4 meaningful
    intervene = risk_sig[:, 3:4] > 0.7                                   # (BM,1)
    col = jax.lax.broadcasted_iota(jnp.int32, out_ref.shape, 1)
    # cols 0:4 = risk sigmoids, cols 4:7 = final control (adj or fallback ctrl)
    out_ref[...] = jnp.where(col < 4, risk_sig, jnp.where(intervene, adj, aux))


# ------------------------------- parameters ----------------------------------
def _init_linear(key, fan_in, fan_out):
    kw, kb = jax.random.split(key)
    bound = 1.0 / float(fan_in) ** 0.5
    w = jax.random.uniform(kw, (fan_in, fan_out), jnp.float32, -bound, bound)
    b = jax.random.uniform(kb, (fan_out,), jnp.float32, -bound, bound)
    return w, b


def init_params(key):
    ks = jax.random.split(key, 6)
    w1, b1 = _init_linear(ks[0], PERCEPTION_C + CTRL_D + STATE_D, 128)
    w2, b2 = _init_linear(ks[1], 128, 64)
    w3, b3 = _init_linear(ks[2], 64, 4)
    iw1, ib1 = _init_linear(ks[3], 4 + CTRL_D, 64)
    iw2, ib2 = _init_linear(ks[4], 64, 32)
    iw3, ib3 = _init_linear(ks[5], 32, 3)
    return dict(w1=w1, b1=b1, w2=w2, b2=b2, w3=w3, b3=b3,
                iw1=iw1, ib1=ib1, iw2=iw2, ib2=ib2, iw3=iw3, ib3=ib3)


def pack_params(p):
    """Pack all 12 weight/bias arrays into a single bf16 (ROWS, 128) slab."""
    s = jnp.zeros((ROWS, 128), jnp.float32)
    s = s.at[0:265, :].set(p["w1"])                      # [perception | ctrl | state] rows
    s = s.at[265, :].set(p["b1"])                        # bias via ones-column in input
    s = s.at[R_W2:R_W2 + 128, 0:64].set(p["w2"])
    s = s.at[R_B2, 0:64].set(p["b2"])
    s = s.at[R_W3:R_W3 + 64, 0:4].set(p["w3"])
    s = s.at[R_B3, 0:4].set(p["b3"])
    s = s.at[R_IW1:R_IW1 + 7, 0:64].set(p["iw1"])        # rows 0:4 risk, 4:7 ctrl
    s = s.at[R_IW1 + 7, 0:64].set(p["ib1"])              # bias via lane-7 = 1.0 in g_in
    s = s.at[R_IW2:R_IW2 + 64, 0:32].set(p["iw2"])
    s = s.at[R_IB2, 0:32].set(p["ib2"])
    s = s.at[R_IW3:R_IW3 + 32, 4:7].set(p["iw3"])        # shifted to output lanes 4:7
    s = s.at[R_IB3, 4:7].set(p["ib3"])
    return s.astype(jnp.bfloat16)


# --------------------------------- tiling -------------------------------------
def _max_batch_tile():
    # v5e's MXU is 4x128^2 -> 128-row tiles already fill it; v6e/v7x are 2x256^2.
    try:
        kind = jax.devices()[0].device_kind.lower()
    except Exception:
        kind = ""
    return 128 if "v5" in kind else 256


def _batch_tiling(b):
    ceil_to = lambda x, m: -(-x // m) * m
    if b <= 32:
        bm = max(16, ceil_to(b, 16))             # 16-row tiles: clean bf16 packing
        return bm, bm
    mt = _max_batch_tile()
    if b <= 2 * mt:
        bm = ceil_to(-(-b // 2), 16)             # guaranteed 2 grid steps (v7x: both TCs busy)
        return bm, 2 * bm
    return mt, ceil_to(b, mt)


# --------------------------------- wrapper ------------------------------------
@jax.jit
def safety_module_forward(slab, perception_features,
                          predicted_trajectories, planned_path,
                          proposed_control, vehicle_state):
    # predicted_trajectories / planned_path are unused in the reference forward.
    del predicted_trajectories, planned_path
    b = perception_features.shape[0]
    assert perception_features.shape[1] == PERCEPTION_C

    ctrl = proposed_control.astype(jnp.float32)
    state = vehicle_state.astype(jnp.float32)

    # Spatial mean in the wrapper: the kernel only ever sees (B, 384).
    pf_mean = jnp.mean(perception_features.astype(jnp.float32), axis=(2, 3))
    pf_in = jnp.concatenate([pf_mean, ctrl, state, jnp.ones((b, 1), jnp.float32)], axis=1)
    pf_in = jnp.pad(pf_in, ((0, 0), (0, K_IN - pf_in.shape[1]))).astype(jnp.bfloat16)

    bm, bp = _batch_tiling(b)
    grid = (bp // bm,)
    pf_in = jnp.pad(pf_in, ((0, bp - b), (0, 0)))

    # Lane-dense auxiliary input: lanes 4:7 = proposed_control (fallback final control
    # AND intervention-L1 operand), lane 7 = 1.0 (intervention bias lane), rest zero.
    aux = jnp.zeros((bp, 128), jnp.float32)
    aux = aux.at[:b, 4:4 + CTRL_D].set(ctrl)
    aux = aux.at[:b, 7].set(1.0)

    # Weight slab index_map is constant, so it is DMA'd once and stays resident.
    out = pl.pallas_call(
        _safety_kernel,
        out_shape=jax.ShapeDtypeStruct((bp, 128), jnp.float32),
        grid=grid,
        in_specs=[
            pl.BlockSpec((bm, K_IN), lambda i: (i, 0)),
            pl.BlockSpec((bm, 128), lambda i: (i, 0)),
            pl.BlockSpec((ROWS, 128), lambda i: (0, 0)),
        ],
        out_specs=pl.BlockSpec((bm, 128), lambda i: (i, 0)),
        compiler_params=pltpu.CompilerParams(dimension_semantics=("parallel",)),
    )(pf_in, aux, slab)

    risk_sig = out[:b, 0:4]
    final_control = out[:b, 4:4 + CTRL_D]
    overall_risk = risk_sig[:, 3]
    return {
        "final_control": final_control,
        "collision_risk": risk_sig[:, 0],
        "stability_risk": risk_sig[:, 1],
        "compliance_risk": risk_sig[:, 2],
        "overall_risk": overall_risk,
        "intervention_applied": overall_risk > 0.7,
    }


# ----------------------------------- main -------------------------------------
if __name__ == "__main__":
    key = jax.random.PRNGKey(0)
    k_params, k_pf, k_traj, k_path, k_ctrl, k_state = jax.random.split(key, 6)

    slab = pack_params(init_params(k_params))

    B, C, H, W = 2, PERCEPTION_C, 4, 4
    perception_features = jax.random.normal(k_pf, (B, C, H, W), jnp.float32)
    predicted_trajectories = jax.random.normal(k_traj, (B, 8, 2), jnp.float32)  # unused
    planned_path = jax.random.normal(k_path, (B, 8, 2), jnp.float32)            # unused
    proposed_control = jax.random.normal(k_ctrl, (B, CTRL_D), jnp.float32)
    vehicle_state = jax.random.normal(k_state, (B, STATE_D), jnp.float32)

    out = safety_module_forward(slab, perception_features,
                                predicted_trajectories, planned_path,
                                proposed_control, vehicle_state)
    jax.block_until_ready(out)

    assert out["final_control"].shape == (B, CTRL_D)
    assert out["collision_risk"].shape == (B,)
    assert out["overall_risk"].shape == (B,)
    assert out["intervention_applied"].dtype == jnp.bool_
    print("KERNEL_OK")
</pallas_src>

<mosaic_0001>
module attributes {stable_mosaic.version = 11 : i64} {
  func.func @_safety_kernel(%arg0: i32, %arg1: memref<16x384xbf16, #tpu.memory_space<vmem>>, %arg2: memref<16x128xf32, #tpu.memory_space<vmem>>, %arg3: memref<1088x128xbf16, #tpu.memory_space<vmem>>, %arg4: memref<16x128xf32, #tpu.memory_space<vmem>>) attributes {dimension_semantics = [#tpu.dimension_semantics<parallel>], iteration_bounds = array<i64: 1>, scalar_prefetch = 0 : i64, scratch_operands = 0 : i64, tpu.core_type = #tpu.core_type<tc>, window_params = [{transform_indices = @transform_0, window_bounds = array<i64: 16, 384>}, {transform_indices = @transform_1, window_bounds = array<i64: 16, 128>}, {pipeline_mode = #tpu.pipeline_mode<synchronous>, transform_indices = @transform_2, window_bounds = array<i64: 1088, 128>}, {transform_indices = @transform_3, window_bounds = array<i64: 16, 128>}]} {
    %c0 = arith.constant 0 : index
    %c0_0 = arith.constant 0 : index
    %0 = vector.load %arg1[%c0, %c0_0] : memref<16x384xbf16, #tpu.memory_space<vmem>>, vector<16x384xbf16>
    %c0_1 = arith.constant 0 : index
    %c0_2 = arith.constant 0 : index
    %1 = vector.load %arg2[%c0_1, %c0_2] : memref<16x128xf32, #tpu.memory_space<vmem>>, vector<16x128xf32>
    %c0_3 = arith.constant 0 : index
    %c0_4 = arith.constant 0 : index
    %2 = vector.load %arg3[%c0_3, %c0_4] : memref<1088x128xbf16, #tpu.memory_space<vmem>>, vector<384x128xbf16>
    %cst = arith.constant dense<0.000000e+00> : vector<16x128xf32>
    %3 = tpu.matmul %0, %2, %cst {dimension_numbers = #tpu.dot_dimension_numbers<[1], [0], [0], [1], [0, 0, 1, 1], [], []>} : vector<16x384xbf16>, vector<384x128xbf16>, vector<16x128xf32> -> vector<16x128xf32>
    %cst_5 = arith.constant 0.000000e+00 : f32
    %4 = vector.broadcast %cst_5 : f32 to vector<16x128xf32>
    %5 = arith.maximumf %3, %4 : vector<16x128xf32>
    %6 = arith.truncf %5 : vector<16x128xf32> to vector<16x128xbf16>
    %c384 = arith.constant 384 : index
    %c0_6 = arith.constant 0 : index
    %7 = vector.load %arg3[%c384, %c0_6] : memref<1088x128xbf16, #tpu.memory_space<vmem>>, vector<128x128xbf16>
    %cst_7 = arith.constant dense<0.000000e+00> : vector<16x128xf32>
    %8 = tpu.matmul %6, %7, %cst_7 {dimension_numbers = #tpu.dot_dimension_numbers<[1], [0], [0], [1], [0, 0, 1, 1], [], []>} : vector<16x128xbf16>, vector<128x128xbf16>, vector<16x128xf32> -> vector<16x128xf32>
    %c512 = arith.constant 512 : index
    %c0_8 = arith.constant 0 : index
    %9 = vector.load %arg3[%c512, %c0_8] : memref<1088x128xbf16, #tpu.memory_space<vmem>>, vector<1x128xbf16>
    %10 = arith.extf %9 : vector<1x128xbf16> to vector<1x128xf32>
    %11 = vector.broadcast %10 : vector<1x128xf32> to vector<16x128xf32>
    %12 = arith.addf %8, %11 : vector<16x128xf32>
    %cst_9 = arith.constant 0.000000e+00 : f32
    %13 = vector.broadcast %cst_9 : f32 to vector<16x128xf32>
    %14 = arith.maximumf %12, %13 : vector<16x128xf32>
    %15 = arith.truncf %14 : vector<16x128xf32> to vector<16x128xbf16>
    %c528 = arith.constant 528 : index
    %c0_10 = arith.constant 0 : index
    %16 = vector.load %arg3[%c528, %c0_10] : memref<1088x128xbf16, #tpu.memory_space<vmem>>, vector<128x128xbf16>
    %cst_11 = arith.constant dense<0.000000e+00> : vector<16x128xf32>
    %17 = tpu.matmul %15, %16, %cst_11 {dimension_numbers = #tpu.dot_dimension_numbers<[1], [0], [0], [1], [0, 0, 1, 1], [], []>} : vector<16x128xbf16>, vector<128x128xbf16>, vector<16x128xf32> -> vector<16x128xf32>
    %c656 = arith.constant 656 : index
    %c0_12 = arith.constant 0 : index
    %18 = vector.load %arg3[%c656, %c0_12] : memref<1088x128xbf16, #tpu.memory_space<vmem>>, vector<1x128xbf16>
    %19 = arith.extf %18 : vector<1x128xbf16> to vector<1x128xf32>
    %20 = vector.broadcast %19 : vector<1x128xf32> to vector<16x128xf32>
    %21 = arith.addf %17, %20 : vector<16x128xf32>
    %22 = arith.addf %21, %1 : vector<16x128xf32>
    %23 = arith.truncf %22 : vector<16x128xf32> to vector<16x128xbf16>
    %c672 = arith.constant 672 : index
    %c0_13 = arith.constant 0 : index
    %24 = vector.load %arg3[%c672, %c0_13] : memref<1088x128xbf16, #tpu.memory_space<vmem>>, vector<128x128xbf16>
    %cst_14 = arith.constant dense<0.000000e+00> : vector<16x128xf32>
    %25 = tpu.matmul %23, %24, %cst_14 {dimension_numbers = #tpu.dot_dimension_numbers<[1], [0], [0], [1], [0, 0, 1, 1], [], []>} : vector<16x128xbf16>, vector<128x128xbf16>, vector<16x128xf32> -> vector<16x128xf32>
    %cst_15 = arith.constant 0.000000e+00 : f32
    %26 = vector.broadcast %cst_15 : f32 to vector<16x128xf32>
    %27 = arith.maximumf %25, %26 : vector<16x128xf32>
    %28 = arith.truncf %27 : vector<16x128xf32> to vector<16x128xbf16>
    %c800 = arith.constant 800 : index
    %c0_16 = arith.constant 0 : index
    %29 = vector.load %arg3[%c800, %c0_16] : memref<1088x128xbf16, #tpu.memory_space<vmem>>, vector<128x128xbf16>
    %cst_17 = arith.constant dense<0.000000e+00> : vector<16x128xf32>
    %30 = tpu.matmul %28, %29, %cst_17 {dimension_numbers = #tpu.dot_dimension_numbers<[1], [0], [0], [1], [0, 0, 1, 1], [], []>} : vector<16x128xbf16>, vector<128x128xbf16>, vector<16x128xf32> -> vector<16x128xf32>
    %c928 = arith.constant 928 : index
    %c0_18 = arith.constant 0 : index
    %31 = vector.load %arg3[%c928, %c0_18] : memref<1088x128xbf16, #tpu.memory_space<vmem>>, vector<1x128xbf16>
    %32 = arith.extf %31 : vector<1x128xbf16> to vector<1x128xf32>
    %33 = vector.broadcast %32 : vector<1x128xf32> to vector<16x128xf32>
    %34 = arith.addf %30, %33 : vector<16x128xf32>
    %cst_19 = arith.constant 0.000000e+00 : f32
    %35 = vector.broadcast %cst_19 : f32 to vector<16x128xf32>
    %36 = arith.maximumf %34, %35 : vector<16x128xf32>
    %37 = arith.truncf %36 : vector<16x128xf32> to vector<16x128xbf16>
    %c944 = arith.constant 944 : index
    %c0_20 = arith.constant 0 : index
    %38 = vector.load %arg3[%c944, %c0_20] : memref<1088x128xbf16, #tpu.memory_space<vmem>>, vector<128x128xbf16>
    %cst_21 = arith.constant dense<0.000000e+00> : vector<16x128xf32>
    %39 = tpu.matmul %37, %38, %cst_21 {dimension_numbers = #tpu.dot_dimension_numbers<[1], [0], [0], [1], [0, 0, 1, 1], [], []>} : vector<16x128xbf16>, vector<128x128xbf16>, vector<16x128xf32> -> vector<16x128xf32>
    %c1072 = arith.constant 1072 : index
    %c0_22 = arith.constant 0 : index
    %40 = vector.load %arg3[%c1072, %c0_22] : memref<1088x128xbf16, #tpu.memory_space<vmem>>, vector<1x128xbf16>
    %41 = arith.extf %40 : vector<1x128xbf16> to vector<1x128xf32>
    %42 = vector.broadcast %41 : vector<1x128xf32> to vector<16x128xf32>
    %43 = arith.addf %39, %42 : vector<16x128xf32>
    %44 = arith.negf %21 : vector<16x128xf32>
    %45 = math.exp %44 : vector<16x128xf32>
    %cst_23 = arith.constant 1.000000e+00 : f32
    %46 = vector.broadcast %cst_23 : f32 to vector<16x128xf32>
    %47 = arith.addf %46, %45 : vector<16x128xf32>
    %48 = arith.divf %46, %47 : vector<16x128xf32>
    %49 = vector.extract_strided_slice %48 {offsets = [0, 3], sizes = [16, 1], strides = [1, 1]} : vector<16x128xf32> to vector<16x1xf32>
    %cst_24 = arith.constant 0.699999988 : f32
    %50 = vector.broadcast %cst_24 : f32 to vector<16x1xf32>
    %51 = arith.cmpf ogt, %49, %50 : vector<16x1xf32>
    %52 = tpu.iota {dimensions = array<i32: 1>} : vector<16x128xi32>
    %c4_i32 = arith.constant 4 : i32
    %53 = vector.broadcast %c4_i32 : i32 to vector<16x128xi32>
    %54 = arith.cmpi slt, %52, %53 : vector<16x128xi32>
    %55 = vector.shape_cast %51 : vector<16x1xi1> to vector<16x1xi1>
    %56 = vector.broadcast %55 : vector<16x1xi1> to vector<16x128xi1>
    %57 = arith.select %56, %43, %1 : vector<16x128xi1>, vector<16x128xf32>
    %58 = arith.select %54, %48, %57 : vector<16x128xi1>, vector<16x128xf32>
    %c0_25 = arith.constant 0 : index
    %c0_26 = arith.constant 0 : index
    %59 = vector.load %arg4[%c0_25, %c0_26] : memref<16x128xf32, #tpu.memory_space<vmem>>, vector<16x128xf32>
    tpu.vector_store %arg4[%c0_25, %c0_26], %58 {strides = array<i32>} : memref<16x128xf32, #tpu.memory_space<vmem>>, vector<16x128xf32>,
    return
  }
  func.func @transform_0(%arg0: i32) -> (i32, i32) {
    %c0_i32 = arith.constant 0 : i32
    %c0_i32_0 = arith.constant 0 : i32
    return %arg0, %c0_i32 : i32, i32
  }
  func.func @transform_1(%arg0: i32) -> (i32, i32) {
    %c0_i32 = arith.constant 0 : i32
    %c0_i32_0 = arith.constant 0 : i32
    return %arg0, %c0_i32 : i32, i32
  }
  func.func @transform_2(%arg0: i32) -> (i32, i32) {
    %c0_i32 = arith.constant 0 : i32
    %c0_i32_0 = arith.constant 0 : i32
    %c0_i32_1 = arith.constant 0 : i32
    return %c0_i32, %c0_i32_0 : i32, i32
  }
  func.func @transform_3(%arg0: i32) -> (i32, i32) {
    %c0_i32 = arith.constant 0 : i32
    %c0_i32_0 = arith.constant 0 : i32
    return %arg0, %c0_i32 : i32, i32
  }
}

</mosaic_0001>

<bundles_post_ra>
// kernel: safety_module_forward.1
= control target key start
LH: loop header
LB: loop body
LE: loop exit
PB: predicated region body
PF: predicated region fallthrough
CT: control target
= control target key end

     0   :  { %8 = vsyncpa [#allocation3], 0  ;;  %s1300_s12 = smov [#allocation2]   ;;  %s1444_s0 = inlined_call_operand.vmem [shape: bf16[16,384], index: 0, kind: input, shape index: {}]   ;;  %s1445_s1 = inlined_call_operand.vmem [shape: f32[16,128], index: 1, kind: input, shape index: {}]   ;;  %s1446_s2 = inlined_call_operand.hbm [shape: bf16[1088,128], index: 2, kind: input, shape index: {}]   ;;  %s1447_s3 = inlined_call_operand.vmem [shape: f32[16,128], index: 3, kind: output, shape index: {}]  }
   0x1   :  { %s18_s13 = sshll.u32 %s1300_s12, 4  ;;  %s1276_s16 = scalar_lea.hbm %s1446_s2, 8704  ;;  %s19_s13 = int_to_ptr.vmem [resolvable:$true] %s18_s13 }
   0x2   :  { %p1277_p0 = scmp.ne.s32.totalorder %s1446_s2, %s1276_s16  ;;  %p1280_p1 = scmp.lt.u32.totalorder %s1276_s16, %s1446_s2 }
   0x4   :  { %p1282_p2 = pnand %p1280_p1, %p1277_p0 }
   0x6   :  { %1285 = shalt.err (!%p1282_p2)
}
   0x7   :  { %s1286_s21 = scalar_lea.vmem %s19_s13, 8704  ;;  %p1291_p4 = scmp.lt.s32.totalorder %s19_s13, %s19_s13 }
   0x8   :  { %p1287_p3 = scmp.ne.s32.totalorder %s19_s13, %s1286_s21  ;;  %p1292_p5 = scmp.lt.s32.totalorder %s1286_s21, %s1286_s21 }
   0xa   :  { %p1293_p6 = por %p1292_p5, %p1291_p4 }
   0xc   :  { %p1294_p7 = pnand %p1293_p6, %p1287_p3 }
   0xe   :  { %1297 = shalt.err (!%p1294_p7)
}
   0xf   :  { %s1301_s22 = smov 64   ;;  %s1302_s23 = smov 4  }
  0x10   :  { %24 = dma.hbm_to_vmem [thread:$0]  %s1446_s2, 8704, %s19_s13, [#allocation3], %s1301_s22, %s1301_s22, %s1302_s23  }
  0x11   :  { %1298 = dma.done.wait [#allocation3], 8704  }
  0x12   :  { %1299 = vsyncadd [#allocation3], 4294958592  ;;  %v1303_v0 = vmov 0.0   ;;  %vm1304_vm0 = vmmov 0   ;;  %v1200_v1 = vld [vmem:[#allocation2 + $0x40] sm:$0xff]   ;;  %v1203_v4 = vld [vmem:[#allocation2 + $0x48] sm:$0xff]  }
  0x13   :  { %1072 = vmatprep.subr.bf16.mxu1 %v1303_v0  ;;  %1088 = vmatprep.mubr.msk.bf16.mxu1 %vm1304_vm0, %v1303_v0  ;;  %v1201_v2 = vld [vmem:[#allocation2] sm:$0xff]   ;;  %v1204_v5 = vld [vmem:[#allocation2 + $0x8] sm:$0xff]   ;;  %v1206_v7 = vld [vmem:[#allocation2 + $0x50] sm:$0xff]  }
  0x14   :  { %996 = vmatprep.subr.bf16.mxu0 %v1200_v1  ;;  %v1202_v3 = vld [vmem:[#allocation2 + $0x80] sm:$0xff]   ;;  %v1205_v6 = vld [vmem:[#allocation2 + $0x88] sm:$0xff]   ;;  %v1207_v8 = vld [vmem:[#allocation2 + $0x10] sm:$0xff]  }
  0x15   :  { %997 = vmatpush3.bf16.msra.mxu0 %v1201_v2  ;;  %1073 = vmatpush3.bf16.msra.mxu1 %v1202_v3  ;;  %v1208_v9 = vld [vmem:[#allocation2 + $0x90] sm:$0xff]   ;;  %v1209_v10 = vld [vmem:[#allocation2 + $0x58] sm:$0xff]   ;;  %v1212_v13 = vld [vmem:[#allocation2 + $0x60] sm:$0xff]   ;;  %v346_v2 = vlaneseq }
  0x16   :  { %998 = vmatprep.subr.bf16.mxu0 %v1203_v4  ;;  %1074 = vmatprep.subr.bf16.mxu1 %v1303_v0  ;;  %v1210_v11 = vld [vmem:[#allocation2 + $0x18] sm:$0xff]   ;;  %v1213_v14 = vld [vmem:[#allocation2 + $0x20] sm:$0xff]   ;;  %v1215_v16 = vld [vmem:[#allocation2 + $0x68] sm:$0xff]  }
  0x17   :  { %v1211_v12 = vld [vmem:[#allocation2 + $0x98] sm:$0xff]   ;;  %v1214_v15 = vld [vmem:[#allocation2 + $0xa0] sm:$0xff]   ;;  %v1216_v17 = vld [vmem:[#allocation2 + $0x28] sm:$0xff]   ;;  %v347_v3 = vshrl.u32 %v346_v2, 7 }
  0x18   :  { %v1217_v18 = vld [vmem:[#allocation2 + $0xa8] sm:$0xff]   ;;  %v1218_v19 = vld [vmem:[#allocation2 + $0x70] sm:$0xff]   ;;  %v1221_v22 = vld [vmem:[#allocation2 + $0x78] sm:$0xff]  }
  0x19   :  { %999 = vmatpush3.bf16.msra.mxu0 %v1204_v5  ;;  %1075 = vmatpush3.bf16.msra.mxu1 %v1205_v6  ;;  %v1219_v20 = vld [vmem:[#allocation2 + $0x30] sm:$0xff]   ;;  %v1222_v24 = vld [vmem:[#allocation2 + $0x38] sm:$0xff]   ;;  %v1224_v26 = vld [vmem:[%s1444_s0] ss:$12 sps:$4 sm:$0xff]   ;;  %v1389_v6 = vsub.s32 0, %v347_v3 }
  0x1a   :  { %1000 = vmatprep.subr.bf16.mxu0 %v1206_v7  ;;  %1076 = vmatprep.subr.bf16.mxu1 %v1303_v0  ;;  %v1220_v21 = vld [vmem:[#allocation2 + $0xb0] sm:$0xff]   ;;  %v1223_v25 = vld [vmem:[#allocation2 + $0xb8] sm:$0xff]   ;;  %v1228_v28 = vld [vmem:[#allocation2 + $0xc0] sm:$0xff]  }
  0x1b   :  { %v1226_v23 = vld [vmem:[%s1444_s0 + $0x4] ss:$12 sps:$4 sm:$0xff]   ;;  %v1227_v27 = vld [vmem:[%s1444_s0 + $0x8] ss:$12 sps:$4 sm:$0xff]   ;;  %v1231_v31 = vld [vmem:[#allocation2 + $0xd8] sm:$0xff]  }
  0x1c   :  { %275 = vmatprep.mubr.bf16.mxu0 %v1226_v23  ;;  %v1229_v29 = vld [vmem:[#allocation2 + $0xc8] sm:$0xff]   ;;  %v1230_v30 = vld [vmem:[#allocation2 + $0xd0] sm:$0xff]   ;;  %v1232_v32 = vld [vmem:[#allocation2 + $0xe0] sm:$0xff]  }
  0x1d   :  { %1001 = vmatpush3.bf16.msra.mxu0 %v1207_v8  ;;  %1077 = vmatpush3.bf16.msra.mxu1 %v1208_v9  ;;  %v1233_v33 = vld [vmem:[#allocation2 + $0xe8] sm:$0xff]   ;;  %v1234_v34 = vld [vmem:[#allocation2 + $0xf0] sm:$0xff]   ;;  %v1235_v35 = vld [vmem:[#allocation2 + $0xf8] sm:$0xff]  }
  0x1e   :  { %1002 = vmatprep.subr.bf16.mxu0 %v1209_v10  ;;  %1078 = vmatprep.subr.bf16.mxu1 %v1303_v0  ;;  %v1236_v36 = vld [vmem:[#allocation2 + $0x108] sm:$0xff]   ;;  %v1237_v37 = vld [vmem:[#allocation2 + $0x110] sm:$0xff]   ;;  %v1238_v38 = vld [vmem:[#allocation2 + $0x118] sm:$0xff]  }
  0x1f   :  { %v1239_v39 = vld [vmem:[#allocation2 + $0x120] sm:$0xff]   ;;  %v1240_v40 = vld [vmem:[#allocation2 + $0x128] sm:$0xff]   ;;  %v1241_v41 = vld [vmem:[#allocation2 + $0x130] sm:$0xff]  }
  0x20   :  { %v1242_v57 = vld [vmem:[#allocation2 + $0x138] sm:$0xff]   ;;  %v1243_v58 = vld [vmem:[#allocation2 + $0x140] sm:$0xff]   ;;  %v1244_v59 = vld [vmem:[#allocation2 + $0x150] sm:$0xff]  }
  0x21   :  { %1003 = vmatpush3.bf16.msra.mxu0 %v1210_v11  ;;  %1079 = vmatpush3.bf16.msra.mxu1 %v1211_v12  ;;  %v1245_v60 = vld [vmem:[#allocation2 + $0x158] sm:$0xff]   ;;  %v1246_v61 = vld [vmem:[#allocation2 + $0x160] sm:$0xff]   ;;  %v1247_v62 = vld [vmem:[#allocation2 + $0x168] sm:$0xff]  }
  0x22   :  { %1004 = vmatprep.subr.bf16.mxu0 %v1212_v13  ;;  %1080 = vmatprep.subr.bf16.mxu1 %v1303_v0  ;;  %v1248_v63 = vld [vmem:[#allocation2 + $0x170] sm:$0xff]   ;;  %v1249_v1 = vld [vmem:[#allocation2 + $0x178] sm:$0xff]   ;;  %v344_v4 = vld [vmem:[#allocation2 + $0x100] sm:$0x1] }
  0x23   :  { %v345_v5 = vunpack.c.l.bf16 %v344_v4  ;;  %v1266_v4 = vld [vmem:[#allocation2 + $0x208] sm:$0xff]  }
  0x25   :  { %1005 = vmatpush3.bf16.msra.mxu0 %v1213_v14  ;;  %1081 = vmatpush3.bf16.msra.mxu1 %v1214_v15  ;;  %v349_v7 = vrot.slane %v345_v5, %v1389_v6  ;;  %v1267_v5 = vld [vmem:[#allocation2 + $0x210] sm:$0xff]  }
  0x26   :  { %1006 = vmatprep.subr.bf16.mxu0 %v1215_v16  ;;  %1082 = vmatprep.subr.bf16.mxu1 %v1303_v0 }
  0x29   :  { %1007 = vmatpush3.bf16.msra.mxu0 %v1216_v17  ;;  %1083 = vmatpush3.bf16.msra.mxu1 %v1217_v18  ;;  %v1250_v17 = vld [vmem:[#allocation2 + $0x180] sm:$0xff]   ;;  %v1251_v18 = vld [vmem:[#allocation2 + $0x188] sm:$0xff]  }
  0x2a   :  { %1008 = vmatprep.subr.bf16.mxu0 %v1218_v19  ;;  %1084 = vmatprep.subr.bf16.mxu1 %v1303_v0  ;;  %v1305_v19 = vmov 3  }
  0x2b   :  { %1199 = vset.pattern.permute.xlu0 %v1305_v19  ;;  %v794_v19 = vld [vmem:[#allocation2 + $0x218] sm:$0x1] }
  0x2d   :  { %1009 = vmatpush3.bf16.msra.mxu0 %v1219_v20  ;;  %1085 = vmatpush3.bf16.msra.mxu1 %v1220_v21  ;;  %v458_v20 = vld [vmem:[#allocation2 + $0x148] sm:$0x1] }
  0x2e   :  { %1010 = vmatprep.subr.bf16.mxu0 %v1221_v22  ;;  %1086 = vmatprep.subr.bf16.mxu1 %v1303_v0  ;;  %v459_v21 = vunpack.c.l.bf16 %v458_v20  ;;  %v795_v20 = vunpack.c.l.bf16 %v794_v19 }
  0x30   :  { %v463_v22 = vrot.slane %v459_v21, %v1389_v6 }
  0x31   :  { %1011 = vmatpush3.bf16.msra.mxu0 %v1222_v24  ;;  %1087 = vmatpush3.bf16.msra.mxu1 %v1223_v25 }
  0x32   :  { %1092 = vmatprep.subr.bf16.mxu0 %v1303_v0  ;;  %1112 = vmatprep.subr.bf16.mxu1 %v1303_v0 }
  0x34   :  { %276 = vmatmul.mubr.bf16.vlgmr.msra.gmra.mrb[0].mxu0 %v1224_v26  ;;  %1089 = vmatmul.mubr.bf16.vlgmr.msra.gmra.mrb[0].mxu1 %v1227_v27  ;;  %v1400_v26 = vld [vmem:[%s1445_s1] sm:$0xff]  ;;  %v1405_v27 = vld [vmem:[%s1445_s1 + $0x8] sm:$0xff] }
  0x35   :  { %1093 = vmatpush3.bf16.msra.mxu0 %v1228_v28  ;;  %1108 = vmatprep.mubr.msk.bf16.mxu0 %vm1304_vm0, %v1303_v0 }
  0x36   :  { %1094 = vmatprep.subr.bf16.mxu0 %v1303_v0  ;;  %1128 = vmatprep.mubr.msk.bf16.mxu1 %vm1304_vm0, %v1303_v0 }
  0x37   :  { %1113 = vmatpush3.bf16.msra.mxu1 %v1236_v36 }
  0x38   :  { %1114 = vmatprep.subr.bf16.mxu1 %v1303_v0 }
  0x39   :  { %1095 = vmatpush3.bf16.msra.mxu0 %v1229_v29 }
  0x3a   :  { %1096 = vmatprep.subr.bf16.mxu0 %v1303_v0 }
  0x3b   :  { %1115 = vmatpush3.bf16.msra.mxu1 %v1237_v37 }
  0x3c   :  { %1116 = vmatprep.subr.bf16.mxu1 %v1303_v0 }
  0x3d   :  { %1097 = vmatpush3.bf16.msra.mxu0 %v1230_v30 }
  0x3e   :  { %1098 = vmatprep.subr.bf16.mxu0 %v1303_v0 }
  0x3f   :  { %1117 = vmatpush3.bf16.msra.mxu1 %v1238_v38 }
  0x40   :  { %1118 = vmatprep.subr.bf16.mxu1 %v1303_v0 }
  0x41   :  { %1099 = vmatpush3.bf16.msra.mxu0 %v1231_v31 }
  0x42   :  { %1100 = vmatprep.subr.bf16.mxu0 %v1303_v0 }
  0x43   :  { %1119 = vmatpush3.bf16.msra.mxu1 %v1239_v39 }
  0x44   :  { %1120 = vmatprep.subr.bf16.mxu1 %v1303_v0 }
  0x45   :  { %1101 = vmatpush3.bf16.msra.mxu0 %v1232_v32 }
  0x46   :  { %1102 = vmatprep.subr.bf16.mxu0 %v1303_v0 }
  0x47   :  { %1121 = vmatpush3.bf16.msra.mxu1 %v1240_v40 }
  0x48   :  { %1122 = vmatprep.subr.bf16.mxu1 %v1303_v0 }
  0x49   :  { %1103 = vmatpush3.bf16.msra.mxu0 %v1233_v33 }
  0x4a   :  { %1104 = vmatprep.subr.bf16.mxu0 %v1303_v0 }
  0x4b   :  { %1123 = vmatpush3.bf16.msra.mxu1 %v1241_v41 }
  0x4c   :  { %1124 = vmatprep.subr.bf16.mxu1 %v1303_v0 }
  0x4d   :  { %1105 = vmatpush3.bf16.msra.mxu0 %v1234_v34 }
  0x4e   :  { %1106 = vmatprep.subr.bf16.mxu0 %v1303_v0 }
  0x4f   :  { %1125 = vmatpush3.bf16.msra.mxu1 %v1242_v57  ;;  %v1264_v57 = vld [vmem:[#allocation2 + $0x1f8] sm:$0xff]  }
  0x50   :  { %1126 = vmatprep.subr.bf16.mxu1 %v1303_v0 }
  0x51   :  { %1107 = vmatpush3.bf16.msra.mxu0 %v1235_v35 }
  0x52   :  { %1132 = vmatprep.subr.bf16.mxu0 %v1303_v0 }
  0x53   :  { %1127 = vmatpush3.bf16.msra.mxu1 %v1243_v58  ;;  %v1265_v58 = vld [vmem:[#allocation2 + $0x200] sm:$0xff]  }
  0x54   :  { %1152 = vmatprep.subr.bf16.mxu1 %v1303_v0 }
 0x107   :  { %v1012_v42 = vpop.f32.mrb[0].mxu0  ;;  %v318_v43 = vpop.f32.mrb[0].mxu1 }
 0x108   :  { %v1013_v44 = vpop.f32.mrb[1].mxu0  ;;  %v1090_v46 = vpop.f32.mrb[1].mxu1 }
 0x109   :  { %v1014_v45 = vadd.f32 %v1013_v44, %v1012_v42  ;;  %v1015_v47 = vpop.f32.mrb[2].mxu0  ;;  %v321_v48 = vpop.f32.mrb[2].mxu1  ;;  %v1306_v42 = vmov 0   ;;  %v1253_v46 = vld [vmem:[#allocation2 + $0x198] sm:$0xff]  }
 0x10a   :  { %v1016_v49 = vpop.f32.mrb[3].mxu0  ;;  %v1091_v52 = vpop.f32.mrb[3].mxu1 }
 0x10b   :  { %v319_v50 = vadd.f32 %v1014_v45, %v318_v43  ;;  %v1017_v51 = vadd.f32 %v1016_v49, %v1015_v47  ;;  %v1252_v45 = vld [vmem:[#allocation2 + $0x190] sm:$0xff]   ;;  %v1254_v47 = vld [vmem:[#allocation2 + $0x1a0] sm:$0xff]   ;;  %v1259_v52 = vld [vmem:[#allocation2 + $0x1c8] sm:$0xff]  }
 0x10c   :  { %v1256_v49 = vld [vmem:[#allocation2 + $0x1b0] sm:$0xff]  }
 0x10d   :  { %v322_v53 = vadd.f32 %v1017_v51, %v321_v48  ;;  %v325_v54 = vmax.f32 %v319_v50, 0.0  ;;  %v1255_v48 = vld [vmem:[#allocation2 + $0x1a8] sm:$0xff]   ;;  %v1257_v50 = vld [vmem:[#allocation2 + $0x1b8] sm:$0xff]   ;;  %v1258_v51 = vld [vmem:[#allocation2 + $0x1c0] sm:$0xff]  }
 0x10f   :  { %v326_v55 = vmax.f32 %v322_v53, 0.0  ;;  %v1260_v53 = vld [vmem:[#allocation2 + $0x1d8] sm:$0xff]  }
 0x111   :  { %v327_v56 = vpack.c.bf16 %v326_v55, %v325_v54  ;;  %v1261_v54 = vld [vmem:[#allocation2 + $0x1e0] sm:$0xff]   ;;  %v1262_v55 = vld [vmem:[#allocation2 + $0x1e8] sm:$0xff]  }
 0x113   :  { %1109 = vmatmul.mubr.bf16.vlgmr.msra.gmra.mrb[4].mxu0 %v327_v56  ;;  %v1263_v56 = vld [vmem:[#allocation2 + $0x1f0] sm:$0xff]  }
 0x114   :  { %1148 = vmatprep.mubr.msk.bf16.mxu0 %vm1304_vm0, %v1303_v0  ;;  %1133 = vmatpush3.bf16.msra.mxu0 %v1244_v59 }
 0x115   :  { %1134 = vmatprep.subr.bf16.mxu0 %v1303_v0 }
 0x118   :  { %1135 = vmatpush3.bf16.msra.mxu0 %v1245_v60 }
 0x119   :  { %1136 = vmatprep.subr.bf16.mxu0 %v1303_v0 }
 0x11c   :  { %1137 = vmatpush3.bf16.msra.mxu0 %v1246_v61 }
 0x11d   :  { %1138 = vmatprep.subr.bf16.mxu0 %v1303_v0 }
 0x120   :  { %1139 = vmatpush3.bf16.msra.mxu0 %v1247_v62 }
 0x121   :  { %1140 = vmatprep.subr.bf16.mxu0 %v1303_v0 }
 0x124   :  { %1141 = vmatpush3.bf16.msra.mxu0 %v1248_v63 }
 0x125   :  { %1142 = vmatprep.subr.bf16.mxu0 %v1303_v0 }
 0x128   :  { %1143 = vmatpush3.bf16.msra.mxu0 %v1249_v1 }
 0x129   :  { %1144 = vmatprep.subr.bf16.mxu0 %v1303_v0 }
 0x12c   :  { %1145 = vmatpush3.bf16.msra.mxu0 %v1250_v17 }
 0x12d   :  { %1146 = vmatprep.subr.bf16.mxu0 %v1303_v0 }
 0x130   :  { %1147 = vmatpush3.bf16.msra.mxu0 %v1251_v18 }
 0x131   :  { %1172 = vmatprep.subr.bf16.mxu0 %v1303_v0 }
 0x1e6   :  { %v432_v8 = vpop.f32.mrb[4].mxu0 }
 0x1e7   :  { %v433_v9 = vadd.f32 %v432_v8, %v349_v7  ;;  %v1110_v10 = vpop.f32.mrb[5].mxu0 }
 0x1e8   :  { %v435_v11 = vpop.f32.mrb[6].mxu0 }
 0x1e9   :  { %v436_v12 = vadd.f32 %v435_v11, %v349_v7  ;;  %v1111_v13 = vpop.f32.mrb[7].mxu0  ;;  %v439_v14 = vmax.f32 %v433_v9, 0.0  ;;  %v680_v7 = vld [vmem:[#allocation2 + $0x1d0] sm:$0x1] }
 0x1ea   :  { %v681_v8 = vunpack.c.l.bf16 %v680_v7 }
 0x1eb   :  { %v440_v15 = vmax.f32 %v436_v12, 0.0 }
 0x1ec   :  { %v685_v9 = vrot.slane %v681_v8, %v1389_v6 }
 0x1ed   :  { %v441_v16 = vpack.c.bf16 %v440_v15, %v439_v14 }
 0x1ef   :  { %1129 = vmatmul.mubr.bf16.vlgmr.msra.gmra.mrb[4].mxu1 %v441_v16 }
 0x1f0   :  { %1168 = vmatprep.mubr.msk.bf16.mxu1 %vm1304_vm0, %v1303_v0  ;;  %1153 = vmatpush3.bf16.msra.mxu1 %v1252_v45 }
 0x1f1   :  { %1154 = vmatprep.subr.bf16.mxu1 %v1303_v0 }
 0x1f4   :  { %1155 = vmatpush3.bf16.msra.mxu1 %v1253_v46 }
 0x1f5   :  { %1156 = vmatprep.subr.bf16.mxu1 %v1303_v0 }
 0x1f8   :  { %1157 = vmatpush3.bf16.msra.mxu1 %v1254_v47 }
 0x1f9   :  { %1158 = vmatprep.subr.bf16.mxu1 %v1303_v0 }
 0x1fc   :  { %1159 = vmatpush3.bf16.msra.mxu1 %v1255_v48 }
 0x1fd   :  { %1160 = vmatprep.subr.bf16.mxu1 %v1303_v0 }
 0x200   :  { %1161 = vmatpush3.bf16.msra.mxu1 %v1256_v49 }
 0x201   :  { %1162 = vmatprep.subr.bf16.mxu1 %v1303_v0 }
 0x204   :  { %1163 = vmatpush3.bf16.msra.mxu1 %v1257_v50 }
 0x205   :  { %1164 = vmatprep.subr.bf16.mxu1 %v1303_v0 }
 0x208   :  { %1165 = vmatpush3.bf16.msra.mxu1 %v1258_v51 }
 0x209   :  { %1166 = vmatprep.subr.bf16.mxu1 %v1303_v0 }
 0x20c   :  { %1167 = vmatpush3.bf16.msra.mxu1 %v1259_v52 }
 0x2c2   :  { %v546_v23 = vpop.f32.mrb[4].mxu1 }
 0x2c3   :  { %v547_v24 = vadd.f32 %v546_v23, %v463_v22  ;;  %v1130_v25 = vpop.f32.mrb[5].mxu1 }
 0x2c4   :  { %v549_v28 = vpop.f32.mrb[6].mxu1 }
 0x2c5   :  { %v994_v29 = vmul.f32 -1.442695, %v547_v24  ;;  %v550_v30 = vadd.f32 %v549_v28, %v463_v22  ;;  %v1131_v31 = vpop.f32.mrb[7].mxu1  ;;  %v553_v32 = vadd.f32 %v547_v24, %v1400_v26  ;;  %v904_v22 = vand.u32 127, %v346_v2 }
 0x2c7   :  { %1268 = vpow2.f32 %v994_v29  ;;  %v554_v33 = vadd.f32 %v550_v30, %v1405_v27  ;;  %v995_v34 = vmul.f32 -1.442695, %v550_v30  ;;  %vm905_vm3 = vcmp.lt.s32.totalorder %v904_v22, 4 }
 0x2c9   :  { %v555_v35 = vpack.c.bf16 %v554_v33, %v553_v32  ;;  %1270 = vpow2.f32 %v995_v34 }
 0x2cb   :  { %1149 = vmatmul.mubr.bf16.vlgmr.msra.gmra.mrb[8].mxu0 %v555_v35 }
 0x2cc   :  { %1188 = vmatprep.mubr.msk.bf16.mxu0 %vm1304_vm0, %v1303_v0  ;;  %1173 = vmatpush3.bf16.msra.mxu0 %v1260_v53 }
 0x2cd   :  { %1174 = vmatprep.subr.bf16.mxu0 %v1303_v0 }
 0x2d0   :  { %1175 = vmatpush3.bf16.msra.mxu0 %v1261_v54 }
 0x2d1   :  { %v1269_v36 = vpop.eup %1268  ;;  %1176 = vmatprep.subr.bf16.mxu0 %v1303_v0 }
 0x2d2   :  { %v895_v37 = vadd.f32 1.0, %v1269_v36 }
 0x2d3   :  { %v1271_v38 = vpop.eup %1270 }
 0x2d4   :  { %1272 = vrcp.f32 %v895_v37  ;;  %v896_v39 = vadd.f32 1.0, %v1271_v38  ;;  %1177 = vmatpush3.bf16.msra.mxu0 %v1262_v55 }
 0x2d5   :  { %1178 = vmatprep.subr.bf16.mxu0 %v1303_v0 }
 0x2d6   :  { %1274 = vrcp.f32 %v896_v39 }
 0x2d8   :  { %1179 = vmatpush3.bf16.msra.mxu0 %v1263_v56 }
 0x2d9   :  { %1180 = vmatprep.subr.bf16.mxu0 %v1303_v0 }
 0x2dc   :  { %1181 = vmatpush3.bf16.msra.mxu0 %v1264_v57 }
 0x2dd   :  { %1182 = vmatprep.subr.bf16.mxu0 %v1303_v0 }
 0x2de   :  { %v1411_v40 = vpop.eup %1272 }
 0x2df   :  { %vm901_vm1 = vcmp.gt.f32.partialorder %v1411_v40, 0.7 }
 0x2e0   :  { %v1414_v41 = vpop.eup %1274  ;;  %v906_v43 = vsel %vm901_vm1, 1, %v1306_v42  ;;  %1183 = vmatpush3.bf16.msra.mxu0 %v1265_v58 }
 0x2e1   :  { %909 = vperm.xlu0 %1199, %v906_v43   ;;  %vm902_vm2 = vcmp.gt.f32.partialorder %v1414_v41, 0.7  ;;  %1184 = vmatprep.subr.bf16.mxu0 %v1303_v0 }
 0x2e2   :  { %v907_v44 = vsel %vm902_vm2, 1, %v1306_v42 }
 0x2e4   :  { %1185 = vmatpush3.bf16.msra.mxu0 %v1266_v4 }
 0x2e5   :  { %912 = vperm.xlu0 %1199, %v907_v44   ;;  %1186 = vmatprep.subr.bf16.mxu0 %v1303_v0  ;;  %v799_v0 = vrot.slane %v795_v20, %v1389_v6 }
 0x2e8   :  { %1187 = vmatpush3.bf16.msra.mxu0 %v1267_v5 }
 0x360   :  { %v910_v21 = vpop.permute.xlu0 %909 }
 0x361   :  { %vm914_vm4 = vcmp.eq.s32.totalorder %v910_v21, 1 }
 0x364   :  { %v913_v24 = vpop.permute.xlu0 %912 }
 0x365   :  { %vm915_vm5 = vcmp.eq.s32.totalorder %v913_v24, 1 }
 0x39e   :  { %v654_v59 = vpop.f32.mrb[8].mxu0 }
 0x39f   :  { %v1150_v60 = vpop.f32.mrb[9].mxu0  ;;  %v661_v62 = vmax.f32 %v654_v59, 0.0 }
 0x3a0   :  { %v657_v61 = vpop.f32.mrb[10].mxu0 }
 0x3a1   :  { %v662_v63 = vmax.f32 %v657_v61, 0.0  ;;  %v1151_v1 = vpop.f32.mrb[11].mxu0 }
 0x3a3   :  { %v663_v3 = vpack.c.bf16 %v662_v63, %v661_v62 }
 0x3a5   :  { %1169 = vmatmul.mubr.bf16.vlgmr.msra.gmra.mrb[8].mxu1 %v663_v3 }
 0x478   :  { %v768_v10 = vpop.f32.mrb[8].mxu1 }
 0x479   :  { %v769_v11 = vadd.f32 %v768_v10, %v685_v9  ;;  %v1170_v12 = vpop.f32.mrb[9].mxu1 }
 0x47a   :  { %v771_v13 = vpop.f32.mrb[10].mxu1 }
 0x47b   :  { %v772_v14 = vadd.f32 %v771_v13, %v685_v9  ;;  %v1171_v15 = vpop.f32.mrb[11].mxu1  ;;  %v775_v16 = vmax.f32 %v769_v11, 0.0 }
 0x47d   :  { %v776_v17 = vmax.f32 %v772_v14, 0.0 }
 0x47f   :  { %v777_v18 = vpack.c.bf16 %v776_v17, %v775_v16 }
 0x481   :  { %1189 = vmatmul.mubr.bf16.vlgmr.msra.gmra.mrb[12].mxu0 %v777_v18 }
 0x554   :  { %v882_v23 = vpop.f32.mrb[12].mxu0 }
 0x555   :  { %v883_v25 = vadd.f32 %v882_v23, %v799_v0  ;;  %v1190_v28 = vpop.f32.mrb[13].mxu0 }
 0x556   :  { %v885_v29 = vpop.f32.mrb[14].mxu0 }
 0x557   :  { %v916_v30 = vsel %vm914_vm4, %v883_v25, %v1400_v26  ;;  %v886_v31 = vadd.f32 %v885_v29, %v799_v0  ;;  %v1191_v32 = vpop.f32.mrb[15].mxu0 }
 0x558   :  { %v918_v33 = vsel %vm905_vm3, %v1411_v40, %v916_v30 }
 0x559   :  { %920 = vst [vmem:[%s1447_s3] sm:$0xff] %v918_v33  ;;  %v917_v2 = vsel %vm915_vm5, %v886_v31, %v1405_v27 }
 0x55a   :  { %v919_v6 = vsel %vm905_vm3, %v1414_v41, %v917_v2 }
 0x55b   :  { %921 = vst [vmem:[%s1447_s3 + $0x8] sm:$0xff] %v919_v6 }
 0x55c   :  { %926 = vsyncpa [#allocation3], 1 }

</bundles_post_ra>
